<compile_context>
chip_gen: v6e
topology: v6e:2x2x1
jax: 0.10.0
libtpu: 0.0.40
codegen_flags: <defaults>
</compile_context>

<pallas_src>
import functools

import jax
import jax.numpy as jnp
from jax.experimental import pallas as pl
from jax.experimental.pallas import tpu as pltpu


# ----------------------------------------------------------------------------
# helpers
# ----------------------------------------------------------------------------
def _round_up(x, m):
    return ((x + m - 1) // m) * m


def _pick_hw_tile(hw, cap):
    """Largest multiple-of-128 divisor of hw that is <= cap (else full hw)."""
    if hw % 128 != 0:
        return hw
    cap = max(128, (cap // 128) * 128)
    for cand in range(cap, 0, -128):
        if hw % cand == 0:
            return cand
    return hw


def _vmem_limit_bytes():
    """~3/4 of physical VMEM: ~96 MiB on v5e/v6e (128 MiB), ~48 MiB on v7x."""
    try:
        cap = pltpu.get_tpu_info().vmem_capacity_bytes
        return int(cap * 3 // 4)
    except Exception:  # conservative fallback if query is unavailable
        return 48 * 1024 * 1024


# ----------------------------------------------------------------------------
# Kernel 1: text branch (runs once, tiled over 128-row class blocks)
# ----------------------------------------------------------------------------
def _text_branch_kernel(
    presuf_ref,    # (TN, ctx_dim)  f32   precomputed mask_pre*prefix + msuf@suffix
    ctx_ref,       # (n_ctx, ctx_dim) bf16
    mctx_ref,      # (TN, n_ctx)    f32
    invcnt_ref,    # (TN, 1)        f32   precomputed 1/max(counts,1)
    valid_ref,     # (TN, 1)        f32   1 for real classes, 0 for pad rows
    w_pool_ref,    # (ctx_dim, ctx_dim) bf16
    b_pool_ref,    # (1, ctx_dim)   f32
    w_proj_ref,    # (ctx_dim, D)   bf16
    scale_ref,     # (1, 1)         f32   SMEM: exp(logit_scale)
    out_ref,       # (TN, D)        bf16  scale * normalized text feats
):
    f32, bf16 = jnp.float32, jnp.bfloat16

    # masked mean pool over the (virtual) prefix|ctx|suffix concatenation:
    # the constant prefix/suffix part comes in precomputed; ctx part is MXU.
    ctx_sum = jnp.dot(mctx_ref[...].astype(bf16), ctx_ref[...],
                      preferred_element_type=f32)
    pooled = (presuf_ref[...] + ctx_sum) * invcnt_ref[...]

    # BERT-style pooler (dense + tanh) then text projection
    pooler = jnp.tanh(
        jnp.dot(pooled.astype(bf16), w_pool_ref[...],
                preferred_element_type=f32) + b_pool_ref[...])
    txt = jnp.dot(pooler.astype(bf16), w_proj_ref[...],
                  preferred_element_type=f32)

    # L2 normalize (rsqrt -> EUP), fold exp(logit_scale), zero padded rows
    inv_norm = jax.lax.rsqrt(
        jnp.sum(txt * txt, axis=-1, keepdims=True) + 1e-12)
    out_ref[...] = (txt * inv_norm * scale_ref[0, 0]
                    * valid_ref[...]).astype(out_ref.dtype)


def text_branch_pallas(presuf, ctx, mask_ctx, inv_counts, valid,
                       w_pool, b_pool, w_proj, scale, *, tile_n, vmem_limit):
    n_pad, ctx_dim = presuf.shape
    n_ctx = ctx.shape[0]
    d = w_proj.shape[1]
    grid = (n_pad // tile_n,)

    cost = pl.CostEstimate(
        flops=int(2 * n_pad * ctx_dim * (n_ctx + ctx_dim + d)),
        transcendentals=int(n_pad * (ctx_dim + 1)),
        bytes_accessed=int(
            4 * (presuf.size + mask_ctx.size + inv_counts.size + valid.size
                 + b_pool.size)
            + 2 * (ctx.size + w_pool.size + w_proj.size + n_pad * d)),
    )

    return pl.pallas_call(
        _text_branch_kernel,
        out_shape=jax.ShapeDtypeStruct((n_pad, d), jnp.bfloat16),
        grid_spec=pltpu.PrefetchScalarGridSpec(
            num_scalar_prefetch=0,
            grid=grid,
            in_specs=[
                pl.BlockSpec((tile_n, ctx_dim), lambda i: (i, 0)),
                pl.BlockSpec((n_ctx, ctx_dim), lambda i: (0, 0)),
                pl.BlockSpec((tile_n, n_ctx), lambda i: (i, 0)),
                pl.BlockSpec((tile_n, 1), lambda i: (i, 0)),
                pl.BlockSpec((tile_n, 1), lambda i: (i, 0)),
                pl.BlockSpec((ctx_dim, ctx_dim), lambda i: (0, 0)),
                pl.BlockSpec((1, ctx_dim), lambda i: (0, 0)),
                pl.BlockSpec((ctx_dim, d), lambda i: (0, 0)),
                pl.BlockSpec(memory_space=pltpu.MemorySpace.SMEM),
            ],
            out_specs=pl.BlockSpec((tile_n, d), lambda i: (i, 0)),
        ),
        compiler_params=pltpu.CompilerParams(
            dimension_semantics=("parallel",),
            vmem_limit_bytes=vmem_limit),
        cost_estimate=cost,
    )(presuf, ctx, mask_ctx, inv_counts, valid, w_pool, b_pool, w_proj, scale)


# ----------------------------------------------------------------------------
# Kernel 2: image branch + logits (grid over (batch tiles, spatial chunks))
# ----------------------------------------------------------------------------
def _image_logits_kernel(img_ref, w_img_ref, txt_ref, out_ref, acc_ref, *,
                         inv_hw):
    # img_ref : (TB, C, THW) f32      txt_ref : (n_pad, D) bf16 (pre-scaled)
    # out_ref : (TB, n_pad)  f32      acc_ref : (TB, C) f32 scratch
    k = pl.program_id(1)

    @pl.when(k == 0)
    def _():
        acc_ref[...] = jnp.zeros_like(acc_ref)

    # global-average-pool partial sum over this spatial chunk (f32 image read
    # straight from HBM; no wrapper-side bf16 cast pass)
    acc_ref[...] += jnp.sum(img_ref[...], axis=-1)

    @pl.when(k == pl.num_programs(1) - 1)
    def _():
        pooled = acc_ref[...] * inv_hw                                   # (TB, C)
        feat = jnp.dot(pooled.astype(jnp.bfloat16), w_img_ref[...],
                       preferred_element_type=jnp.float32)               # (TB, D)
        inv_norm = jax.lax.rsqrt(
            jnp.sum(feat * feat, axis=-1, keepdims=True) + 1e-12)
        img_n = (feat * inv_norm).astype(jnp.bfloat16)
        # logits = img_n @ txt.T without an explicit transpose (NT contraction)
        out_ref[...] = jax.lax.dot_general(
            img_n, txt_ref[...],
            dimension_numbers=(((1,), (1,)), ((), ())),
            preferred_element_type=jnp.float32)


def image_logits_pallas(img, w_img, txt_scaled, *, tile_b, tile_hw, vmem_limit):
    b_pad, c, hw = img.shape
    d = w_img.shape[1]
    n_out = txt_scaled.shape[0]
    grid = (b_pad // tile_b, hw // tile_hw)
    kernel = functools.partial(_image_logits_kernel, inv_hw=1.0 / float(hw))

    cost = pl.CostEstimate(
        flops=int(b_pad * c * hw + 2 * b_pad * c * d + 2 * b_pad * d * n_out),
        transcendentals=int(b_pad),
        bytes_accessed=int(4 * img.size + 2 * (w_img.size + txt_scaled.size)
                           + 4 * b_pad * n_out),
    )

    return pl.pallas_call(
        kernel,
        out_shape=jax.ShapeDtypeStruct((b_pad, n_out), jnp.float32),
        grid_spec=pltpu.PrefetchScalarGridSpec(
            num_scalar_prefetch=0,
            grid=grid,
            in_specs=[
                pl.BlockSpec((tile_b, c, tile_hw), lambda b, k: (b, 0, k)),
                pl.BlockSpec((c, d), lambda b, k: (0, 0)),
                pl.BlockSpec((n_out, d), lambda b, k: (0, 0)),
            ],
            out_specs=pl.BlockSpec((tile_b, n_out), lambda b, k: (b, 0)),
            scratch_shapes=[pltpu.VMEM((tile_b, c), jnp.float32)],
        ),
        compiler_params=pltpu.CompilerParams(
            dimension_semantics=("parallel", "arbitrary"),
            vmem_limit_bytes=vmem_limit),
        cost_estimate=cost,
    )(img, w_img, txt_scaled)


# ----------------------------------------------------------------------------
# CustomCLIP wrapper (glue in plain JAX)
# ----------------------------------------------------------------------------
def custom_clip_forward(image, params, *, hw_tile_cap=None):
    """image: (B, C, H, W) float32, NCHW like PyTorch."""
    f32, bf16 = jnp.float32, jnp.bfloat16
    B, C, H, W = image.shape
    HW = H * W
    vmem_limit = _vmem_limit_bytes()

    ctx = params["ctx"]                            # (n_ctx, ctx_dim)
    prefix = params["token_prefix"][:, 0, :]       # (n_cls, ctx_dim)
    suffix = params["token_suffix"]                # (n_cls, L-1-n_ctx, ctx_dim)
    mask = params["attention_mask"].astype(f32)    # (n_cls, L)
    w_img, w_pool = params["w_img"], params["w_pool"]
    b_pool, w_proj = params["b_pool"], params["w_proj"]

    n_cls, ctx_dim = prefix.shape
    n_ctx = ctx.shape[0]

    # exp(logit_scale) kept traceable (jnp.exp), passed as an SMEM scalar.
    scale = jnp.exp(jnp.asarray(params["logit_scale"], f32)).reshape(1, 1)

    # ---- PromptLearner ('end'): never materialize the prompt concat.  The
    # constant masked (prefix + suffix) contribution is precomputed once here
    # (model buffers only); the learned ctx part is reduced in-kernel on MXU.
    mask_pre = mask[:, :1]
    mask_ctx = mask[:, 1:1 + n_ctx]
    mask_suf = mask[:, 1 + n_ctx:]
    const_presuf = mask_pre * prefix + jnp.einsum("nl,nld->nd", mask_suf, suffix)
    inv_counts = 1.0 / jnp.maximum(jnp.sum(mask, axis=1, keepdims=True), 1.0)

    # ---- pad classes ONCE to a multiple of 128: 128-row MXU tiles in the
    # text kernel and lane-dense logits; no second pad of the text output.
    TILE_N = 128
    n_pad = _round_up(n_cls, TILE_N)

    def pad_cls(x, value=0.0):
        return jnp.pad(x, ((0, n_pad - n_cls),) + ((0, 0),) * (x.ndim - 1),
                       constant_values=value)

    valid = jnp.ones((n_cls, 1), f32)

    txt_scaled = text_branch_pallas(
        pad_cls(const_presuf.astype(f32)),
        ctx.astype(bf16),
        pad_cls(mask_ctx),
        pad_cls(inv_counts, value=1.0),
        pad_cls(valid),
        w_pool.astype(bf16), b_pool.astype(f32), w_proj.astype(bf16),
        scale, tile_n=TILE_N, vmem_limit=vmem_limit)        # (n_pad, D) bf16

    # ---- image branch: f32 NCHW image fed directly (no wrapper bf16 cast);
    # batch tile as large as the batch allows (up to 128 MXU rows).
    TILE_B = min(128, _round_up(B, 8))
    B_pad = _round_up(B, TILE_B)
    img = image.astype(f32).reshape(B, C, HW)
    img = jnp.pad(img, ((0, B_pad - B), (0, 0), (0, 0)))

    if hw_tile_cap is None:
        # aim for multi-MB f32 blocks per grid step to amortize per-step cost
        hw_tile_cap = max(128, (6 * 1024 * 1024) // (TILE_B * C * 4))
    tile_hw = _pick_hw_tile(HW, hw_tile_cap)

    logits = image_logits_pallas(img, w_img.astype(bf16), txt_scaled,
                                 tile_b=TILE_B, tile_hw=tile_hw,
                                 vmem_limit=vmem_limit)
    return logits[:B, :n_cls]


# ----------------------------------------------------------------------------
# Pure-JAX reference (same bf16/f32 precision choices) for correctness check
# ----------------------------------------------------------------------------
def custom_clip_reference(image, params):
    f32, bf16 = jnp.float32, jnp.bfloat16
    B, C, H, W = image.shape
    ctx = params["ctx"]
    prefix = params["token_prefix"]
    suffix = params["token_suffix"]
    n_cls = prefix.shape[0]

    pooled_img = jnp.mean(image.astype(f32).reshape(B, C, H * W), axis=-1)
    image_features = jnp.dot(pooled_img.astype(bf16),
                             params["w_img"].astype(bf16),
                             preferred_element_type=f32)

    ctx_b = jnp.broadcast_to(ctx.astype(bf16).astype(f32)[None],
                             (n_cls,) + ctx.shape)
    prompts = jnp.concatenate(
        [prefix.astype(f32), ctx_b, suffix.astype(f32)], axis=1)
    mask = params["attention_mask"].astype(f32)
    summed = jnp.sum(prompts * mask[:, :, None], axis=1)
    counts = jnp.maximum(jnp.sum(mask, axis=1, keepdims=True), 1.0)
    pooled = summed / counts
    pooler = jnp.tanh(jnp.dot(pooled.astype(bf16),
                              params["w_pool"].astype(bf16),
                              preferred_element_type=f32)
                      + params["b_pool"].astype(f32))
    text_features = jnp.dot(pooler.astype(bf16),
                            params["w_proj"].astype(bf16),
                            preferred_element_type=f32)

    image_features = image_features * jax.lax.rsqrt(
        jnp.sum(image_features * image_features, -1, keepdims=True) + 1e-12)
    text_features = text_features * jax.lax.rsqrt(
        jnp.sum(text_features * text_features, -1, keepdims=True) + 1e-12)
    scale = jnp.exp(jnp.asarray(params["logit_scale"], f32))
    txt_scaled = (scale * text_features).astype(bf16)
    img_n = image_features.astype(bf16)
    return jnp.dot(img_n, txt_scaled.T, preferred_element_type=f32)


# ----------------------------------------------------------------------------
# Main
# ----------------------------------------------------------------------------
if __name__ == "__main__":
    # Small shapes consistent with the module's structure (real model uses
    # ctx_dim=768, seq_len=77, imsize=224, n_cls up to ~100).
    B, C_IMG, H, W = 2, 4, 16, 16
    N_CLS, N_CTX, SEQ_LEN = 3, 4, 16
    CTX_DIM, FEAT_DIM = 32, 32

    key = jax.random.PRNGKey(0)
    keys = jax.random.split(key, 8)

    # attention mask with per-class padding (prefix + ctx + some suffix tokens)
    lengths = jnp.array([9, 12, 16], dtype=jnp.int32)
    attn_mask = (jnp.arange(SEQ_LEN)[None, :] < lengths[:, None]).astype(
        jnp.float32)

    params = {
        # PromptLearner parameters / buffers
        "ctx": 0.02 * jax.random.normal(keys[0], (N_CTX, CTX_DIM), jnp.float32),
        "token_prefix": 0.02
        * jax.random.normal(keys[1], (N_CLS, 1, CTX_DIM), jnp.float32),
        "token_suffix": 0.02
        * jax.random.normal(
            keys[2], (N_CLS, SEQ_LEN - 1 - N_CTX, CTX_DIM), jnp.float32),
        "attention_mask": attn_mask,
        # Stand-in encoders (see TODO(synk) at top of file)
        "w_img": 0.1 * jax.random.normal(keys[3], (C_IMG, FEAT_DIM), jnp.float32),
        "w_pool": 0.1 * jax.random.normal(keys[4], (CTX_DIM, CTX_DIM), jnp.float32),
        "b_pool": 0.01 * jax.random.normal(keys[5], (1, CTX_DIM), jnp.float32),
        "w_proj": 0.1 * jax.random.normal(keys[6], (CTX_DIM, FEAT_DIM), jnp.float32),
        "logit_scale": float(jnp.log(jnp.asarray(1.0 / 0.07))),  # CLIP init
    }

    image = jax.random.normal(keys[7], (B, C_IMG, H, W), jnp.float32)

    # hw_tile_cap=128 forces a 2-step spatial-reduction grid even at toy shapes.
    logits = custom_clip_forward(image, params, hw_tile_cap=128)
    logits = jax.block_until_ready(logits)

    ref = custom_clip_reference(image, params)
    assert logits.shape == (B, N_CLS)
    assert bool(jnp.allclose(logits, ref, atol=1e-2, rtol=1e-2)), (
        jnp.max(jnp.abs(logits - ref)))

    print("KERNEL_OK")
</pallas_src>

<mosaic_0001>
module attributes {stable_mosaic.version = 11 : i64} {
  func.func @_text_branch_kernel(%arg0: i32, %arg1: memref<128x32xf32, #tpu.memory_space<vmem>>, %arg2: memref<4x32xbf16, #tpu.memory_space<vmem>>, %arg3: memref<128x4xf32, #tpu.memory_space<vmem>>, %arg4: memref<128x1xf32, #tpu.memory_space<vmem>>, %arg5: memref<128x1xf32, #tpu.memory_space<vmem>>, %arg6: memref<32x32xbf16, #tpu.memory_space<vmem>>, %arg7: memref<1x32xf32, #tpu.memory_space<vmem>>, %arg8: memref<32x32xbf16, #tpu.memory_space<vmem>>, %arg9: memref<1x1xf32, #tpu.memory_space<smem>>, %arg10: memref<128x32xbf16, #tpu.memory_space<vmem>>) attributes {dimension_semantics = [#tpu.dimension_semantics<parallel>], iteration_bounds = array<i64: 1>, scalar_prefetch = 0 : i64, scratch_operands = 0 : i64, tpu.core_type = #tpu.core_type<tc>, window_params = [{transform_indices = @transform_0, window_bounds = array<i64: 128, 32>}, {pipeline_mode = #tpu.pipeline_mode<synchronous>, transform_indices = @transform_1, window_bounds = array<i64: 4, 32>}, {transform_indices = @transform_2, window_bounds = array<i64: 128, 4>}, {transform_indices = @transform_3, window_bounds = array<i64: 128, 1>}, {transform_indices = @transform_4, window_bounds = array<i64: 128, 1>}, {pipeline_mode = #tpu.pipeline_mode<synchronous>, transform_indices = @transform_5, window_bounds = array<i64: 32, 32>}, {pipeline_mode = #tpu.pipeline_mode<synchronous>, transform_indices = @transform_6, window_bounds = array<i64: 1, 32>}, {pipeline_mode = #tpu.pipeline_mode<synchronous>, transform_indices = @transform_7, window_bounds = array<i64: 32, 32>}, {transform_indices = @transform_8, window_bounds = array<i64: 1, 1>}, {transform_indices = @transform_9, window_bounds = array<i64: 128, 32>}]} {
    %c0 = arith.constant 0 : index
    %c0_0 = arith.constant 0 : index
    %0 = vector.load %arg3[%c0, %c0_0] : memref<128x4xf32, #tpu.memory_space<vmem>>, vector<128x4xf32>
    %1 = arith.truncf %0 : vector<128x4xf32> to vector<128x4xbf16>
    %c0_1 = arith.constant 0 : index
    %c0_2 = arith.constant 0 : index
    %2 = vector.load %arg2[%c0_1, %c0_2] : memref<4x32xbf16, #tpu.memory_space<vmem>>, vector<4x32xbf16>
    %cst = arith.constant dense<0.000000e+00> : vector<128x32xf32>
    %3 = tpu.matmul %1, %2, %cst {dimension_numbers = #tpu.dot_dimension_numbers<[1], [0], [0], [1], [0, 0, 1, 1], [], []>} : vector<128x4xbf16>, vector<4x32xbf16>, vector<128x32xf32> -> vector<128x32xf32>
    %c0_3 = arith.constant 0 : index
    %c0_4 = arith.constant 0 : index
    %4 = vector.load %arg1[%c0_3, %c0_4] : memref<128x32xf32, #tpu.memory_space<vmem>>, vector<128x32xf32>
    %5 = arith.addf %4, %3 : vector<128x32xf32>
    %c0_5 = arith.constant 0 : index
    %c0_6 = arith.constant 0 : index
    %6 = vector.load %arg4[%c0_5, %c0_6] : memref<128x1xf32, #tpu.memory_space<vmem>>, vector<128x1xf32>
    %7 = vector.broadcast %6 : vector<128x1xf32> to vector<128x32xf32>
    %8 = arith.mulf %5, %7 : vector<128x32xf32>
    %9 = arith.truncf %8 : vector<128x32xf32> to vector<128x32xbf16>
    %c0_7 = arith.constant 0 : index
    %c0_8 = arith.constant 0 : index
    %10 = vector.load %arg6[%c0_7, %c0_8] : memref<32x32xbf16, #tpu.memory_space<vmem>>, vector<32x32xbf16>
    %cst_9 = arith.constant dense<0.000000e+00> : vector<128x32xf32>
    %11 = tpu.matmul %9, %10, %cst_9 {dimension_numbers = #tpu.dot_dimension_numbers<[1], [0], [0], [1], [0, 0, 1, 1], [], []>} : vector<128x32xbf16>, vector<32x32xbf16>, vector<128x32xf32> -> vector<128x32xf32>
    %c0_10 = arith.constant 0 : index
    %c0_11 = arith.constant 0 : index
    %12 = vector.load %arg7[%c0_10, %c0_11] : memref<1x32xf32, #tpu.memory_space<vmem>>, vector<1x32xf32>
    %13 = vector.broadcast %12 : vector<1x32xf32> to vector<128x32xf32>
    %14 = arith.addf %11, %13 : vector<128x32xf32>
    %15 = math.tanh %14 : vector<128x32xf32>
    %16 = arith.truncf %15 : vector<128x32xf32> to vector<128x32xbf16>
    %c0_12 = arith.constant 0 : index
    %c0_13 = arith.constant 0 : index
    %17 = vector.load %arg8[%c0_12, %c0_13] : memref<32x32xbf16, #tpu.memory_space<vmem>>, vector<32x32xbf16>
    %cst_14 = arith.constant dense<0.000000e+00> : vector<128x32xf32>
    %18 = tpu.matmul %16, %17, %cst_14 {dimension_numbers = #tpu.dot_dimension_numbers<[1], [0], [0], [1], [0, 0, 1, 1], [], []>} : vector<128x32xbf16>, vector<32x32xbf16>, vector<128x32xf32> -> vector<128x32xf32>
    %19 = arith.mulf %18, %18 : vector<128x32xf32>
    %cst_15 = arith.constant dense<0.000000e+00> : vector<128xf32>
    %20 = vector.multi_reduction <add>, %19, %cst_15 [1] : vector<128x32xf32> to vector<128xf32>
    %21 = vector.shape_cast %20 : vector<128xf32> to vector<128x1xf32>
    %cst_16 = arith.constant 9.99999996E-13 : f32
    %22 = vector.broadcast %cst_16 : f32 to vector<128x1xf32>
    %23 = arith.addf %21, %22 : vector<128x1xf32>
    %24 = math.rsqrt %23 : vector<128x1xf32>
    %25 = vector.broadcast %24 : vector<128x1xf32> to vector<128x32xf32>
    %26 = arith.mulf %18, %25 : vector<128x32xf32>
    %c0_17 = arith.constant 0 : index
    %c0_18 = arith.constant 0 : index
    %27 = memref.load %arg9[%c0_17, %c0_18] : memref<1x1xf32, #tpu.memory_space<smem>>
    %28 = vector.broadcast %27 : f32 to vector<128x32xf32>
    %29 = arith.mulf %26, %28 : vector<128x32xf32>
    %c0_19 = arith.constant 0 : index
    %c0_20 = arith.constant 0 : index
    %30 = vector.load %arg5[%c0_19, %c0_20] : memref<128x1xf32, #tpu.memory_space<vmem>>, vector<128x1xf32>
    %31 = vector.broadcast %30 : vector<128x1xf32> to vector<128x32xf32>
    %32 = arith.mulf %29, %31 : vector<128x32xf32>
    %33 = arith.truncf %32 : vector<128x32xf32> to vector<128x32xbf16>
    %c0_21 = arith.constant 0 : index
    %c0_22 = arith.constant 0 : index
    %34 = vector.load %arg10[%c0_21, %c0_22] : memref<128x32xbf16, #tpu.memory_space<vmem>>, vector<128x32xbf16>
    tpu.vector_store %arg10[%c0_21, %c0_22], %33 {strides = array<i32>} : memref<128x32xbf16, #tpu.memory_space<vmem>>, vector<128x32xbf16>,
    return
  }
  func.func @transform_0(%arg0: i32) -> (i32, i32) {
    %c0_i32 = arith.constant 0 : i32
    %c0_i32_0 = arith.constant 0 : i32
    return %arg0, %c0_i32 : i32, i32
  }
  func.func @transform_1(%arg0: i32) -> (i32, i32) {
    %c0_i32 = arith.constant 0 : i32
    %c0_i32_0 = arith.constant 0 : i32
    %c0_i32_1 = arith.constant 0 : i32
    return %c0_i32, %c0_i32_0 : i32, i32
  }
  func.func @transform_2(%arg0: i32) -> (i32, i32) {
    %c0_i32 = arith.constant 0 : i32
    %c0_i32_0 = arith.constant 0 : i32
    return %arg0, %c0_i32 : i32, i32
  }
  func.func @transform_3(%arg0: i32) -> (i32, i32) {
    %c0_i32 = arith.constant 0 : i32
    %c0_i32_0 = arith.constant 0 : i32
    return %arg0, %c0_i32 : i32, i32
  }
  func.func @transform_4(%arg0: i32) -> (i32, i32) {
    %c0_i32 = arith.constant 0 : i32
    %c0_i32_0 = arith.constant 0 : i32
    return %arg0, %c0_i32 : i32, i32
  }
  func.func @transform_5(%arg0: i32) -> (i32, i32) {
    %c0_i32 = arith.constant 0 : i32
    %c0_i32_0 = arith.constant 0 : i32
    %c0_i32_1 = arith.constant 0 : i32
    return %c0_i32, %c0_i32_0 : i32, i32
  }
  func.func @transform_6(%arg0: i32) -> (i32, i32) {
    %c0_i32 = arith.constant 0 : i32
    %c0_i32_0 = arith.constant 0 : i32
    %c0_i32_1 = arith.constant 0 : i32
    return %c0_i32, %c0_i32_0 : i32, i32
  }
  func.func @transform_7(%arg0: i32) -> (i32, i32) {
    %c0_i32 = arith.constant 0 : i32
    %c0_i32_0 = arith.constant 0 : i32
    %c0_i32_1 = arith.constant 0 : i32
    return %c0_i32, %c0_i32_0 : i32, i32
  }
  func.func @transform_8(%arg0: i32) -> (i32, i32) {
    %c0_i32 = arith.constant 0 : i32
    %c0_i32_0 = arith.constant 0 : i32
    %c0_i32_1 = arith.constant 0 : i32
    return %c0_i32, %c0_i32_0 : i32, i32
  }
  func.func @transform_9(%arg0: i32) -> (i32, i32) {
    %c0_i32 = arith.constant 0 : i32
    %c0_i32_0 = arith.constant 0 : i32
    return %arg0, %c0_i32 : i32, i32
  }
}

</mosaic_0001>

<bundles_post_ra>
// kernel: tpu_custom_call.1
= control target key start
LH: loop header
LB: loop body
LE: loop exit
PB: predicated region body
PF: predicated region fallthrough
CT: control target
= control target key end

     0   :  { %vm84_vm0 = vcmask 1041408   ;;  %vm59_vm1 = vcmask 31744   ;;  %v1193_v3 = vmov 0   ;;  %vm360_vm2 = vcmask 261120   ;;  %s1701_s1 = inlined_call_operand.vmem [shape: bf16[4,32], index: 1, kind: input, shape index: {}]   ;;  %s1702_s2 = inlined_call_operand.vmem [shape: f32[128,4], index: 2, kind: input, shape index: {}]   ;;  %s1703_s3 = inlined_call_operand.vmem [shape: f32[128,1], index: 3, kind: input, shape index: {}]   ;;  %s1704_s4 = inlined_call_operand.vmem [shape: f32[128,1], index: 4, kind: input, shape index: {}]   ;;  %s1705_s5 = inlined_call_operand.vmem [shape: bf16[32,32], index: 5, kind: input, shape index: {}]   ;;  %s1706_s0 = inlined_call_operand.vmem [shape: f32[128,32], index: 0, kind: input, shape index: {}]   ;;  %s1707_s7 = inlined_call_operand.vmem [shape: bf16[32,32], index: 7, kind: input, shape index: {}]   ;;  %s1708_s6 = inlined_call_operand.vmem [shape: f32[1,32], index: 6, kind: input, shape index: {}]   ;;  %s1709_s8 = inlined_call_operand.<no memory space> [shape: f32[1,1], index: 8, kind: input, shape index: {}]   ;;  %s1710_s9 = inlined_call_operand.vmem [shape: bf16[128,32], index: 9, kind: output, shape index: {}]  }
   0x1   :  { %v58_v0 = vld [vmem:[%s1701_s1] sm:$0x3]  ;;  %v35_v2 = vld [vmem:[%s1702_s2 + $0x8] sm:$0xff]  ;;  %1124 = vset.pattern.permute.xlu1 %v1193_v3  ;;  %1123 = vset.pattern.permute.xlu0 %v1193_v3  ;;  %v36_v8 = vld [vmem:[%s1702_s2 + $0x10] sm:$0xff]  ;;  %vm949_vm3 = vcmask 257024  }
   0x2   :  { %v34_v1 = vld [vmem:[%s1702_s2] sm:$0xff]  ;;  %1120 = vmatprep.subr.msk.bf16.mxu0 %vm84_vm0, %v58_v0  ;;  %1121 = vmatprep.subr.msk.bf16.mxu1 %vm84_vm0, %v58_v0  ;;  %v86_v4 = vsel %vm84_vm0, %v58_v0, 0  ;;  %v43_v7 = vld [vmem:[%s1702_s2 + $0x48] sm:$0xff]  ;;  %v37_v10 = vld [vmem:[%s1702_s2 + $0x18] sm:$0xff] }
   0x3   :  { %v50_v5 = vpack.c.bf16 %v35_v2, %v34_v1  ;;  %v42_v6 = vld [vmem:[%s1702_s2 + $0x40] sm:$0xff]  ;;  %1061 = vmatpush3.bf16.msra.mxu0 %v86_v4  ;;  %1119 = vmatpush3.bf16.msra.mxu1 %v86_v4  ;;  %v44_v11 = vld [vmem:[%s1702_s2 + $0x50] sm:$0xff]  ;;  %v45_v12 = vld [vmem:[%s1702_s2 + $0x58] sm:$0xff]  ;;  %v51_v13 = vpack.c.bf16 %v37_v10, %v36_v8 }
   0x4   :  { %v54_v9 = vpack.c.bf16 %v43_v7, %v42_v6  ;;  %v55_v14 = vpack.c.bf16 %v45_v12, %v44_v11  ;;  %v38_v15 = vld [vmem:[%s1702_s2 + $0x20] sm:$0xff]  ;;  %v39_v16 = vld [vmem:[%s1702_s2 + $0x28] sm:$0xff]  ;;  %v40_v21 = vld [vmem:[%s1702_s2 + $0x30] sm:$0xff] }
   0x5   :  { %1062 = vmatprep.mubr.msk.bf16.mxu0 %vm59_vm1, %v50_v5  ;;  %v46_v17 = vld [vmem:[%s1702_s2 + $0x60] sm:$0xff]  ;;  %v52_v18 = vpack.c.bf16 %v39_v16, %v38_v15  ;;  %v47_v19 = vld [vmem:[%s1702_s2 + $0x68] sm:$0xff]  ;;  %v41_v22 = vld [vmem:[%s1702_s2 + $0x38] sm:$0xff] }
   0x6   :  { %1070 = vmatprep.mubr.msk.bf16.mxu1 %vm59_vm1, %v54_v9  ;;  %1063 = vmatmul.mubr.msk.bf16.vlgmr.msra.gmra.mxu0 %vm59_vm1, %v51_v13  ;;  %v56_v20 = vpack.c.bf16 %v47_v19, %v46_v17  ;;  %v219_v23 = vld [vmem:[%s1703_s3 + $0x10] sm:$0xff]  ;;  %v49_v25 = vld [vmem:[%s1702_s2 + $0x78] sm:$0xff]  ;;  %v217_v26 = vld [vmem:[%s1703_s3] sm:$0xff]  ;;  %v53_v29 = vpack.c.bf16 %v41_v22, %v40_v21 }
   0x7   :  { %1071 = vmatmul.mubr.msk.bf16.vlgmr.msra.gmra.mxu1 %vm59_vm1, %v55_v14  ;;  %1066 = vmatprep.mubr.msk.bf16.mxu0 %vm59_vm1, %v52_v18  ;;  %v48_v24 = vld [vmem:[%s1702_s2 + $0x70] sm:$0xff]  ;;  %v220_v27 = vld [vmem:[%s1703_s3 + $0x18] sm:$0xff]  ;;  %v218_v28 = vld [vmem:[%s1703_s3 + $0x8] sm:$0xff] }
   0x8   :  { %245 = vperm.xlu1 %1124, %v219_v23   ;;  %1074 = vmatprep.mubr.msk.bf16.mxu1 %vm59_vm1, %v56_v20  ;;  %v57_v30 = vpack.c.bf16 %v49_v25, %v48_v24  ;;  %v222_v31 = vld [vmem:[%s1703_s3 + $0x28] sm:$0xff]  ;;  %v221_v32 = vld [vmem:[%s1703_s3 + $0x20] sm:$0xff]  ;;  %v224_v33 = vld [vmem:[%s1703_s3 + $0x38] sm:$0xff] }
   0x9   :  { %235 = vperm.xlu0 %1123, %v217_v26   ;;  %v223_v34 = vld [vmem:[%s1703_s3 + $0x30] sm:$0xff]  ;;  %v226_v35 = vld [vmem:[%s1703_s3 + $0x48] sm:$0xff]  ;;  %v225_v36 = vld [vmem:[%s1703_s3 + $0x40] sm:$0xff] }
   0xa   :  { %v228_v37 = vld [vmem:[%s1703_s3 + $0x58] sm:$0xff]  ;;  %v227_v38 = vld [vmem:[%s1703_s3 + $0x50] sm:$0xff]  ;;  %v230_v39 = vld [vmem:[%s1703_s3 + $0x68] sm:$0xff] }
   0xb   :  { %v229_v40 = vld [vmem:[%s1703_s3 + $0x60] sm:$0xff]  ;;  %v232_v41 = vld [vmem:[%s1703_s3 + $0x78] sm:$0xff]  ;;  %v231_v42 = vld [vmem:[%s1703_s3 + $0x70] sm:$0xff] }
   0xc   :  { %250 = vperm.xlu1 %1124, %v220_v27   ;;  %v773_v43 = vld [vmem:[%s1704_s4] sm:$0xff]  ;;  %v774_v44 = vld [vmem:[%s1704_s4 + $0x8] sm:$0xff]  ;;  %v775_v45 = vld [vmem:[%s1704_s4 + $0x10] sm:$0xff] }
   0xd   :  { %240 = vperm.xlu0 %1123, %v218_v28   ;;  %v777_v46 = vld [vmem:[%s1704_s4 + $0x20] sm:$0xff]  ;;  %v776_v47 = vld [vmem:[%s1704_s4 + $0x18] sm:$0xff]  ;;  %v779_v48 = vld [vmem:[%s1704_s4 + $0x30] sm:$0xff] }
   0xe   :  { %1067 = vmatmul.mubr.msk.bf16.gmra.mxu0 %vm59_vm1, %v53_v29  ;;  %v778_v49 = vld [vmem:[%s1704_s4 + $0x28] sm:$0xff]  ;;  %v781_v50 = vld [vmem:[%s1704_s4 + $0x40] sm:$0xff]  ;;  %v780_v51 = vld [vmem:[%s1704_s4 + $0x38] sm:$0xff] }
   0xf   :  { %1075 = vmatmul.mubr.msk.bf16.gmra.mxu1 %vm59_vm1, %v57_v30  ;;  %v783_v52 = vld [vmem:[%s1704_s4 + $0x50] sm:$0xff]  ;;  %v1125_v53 = vld [vmem:[%s1705_s5 + $0x8] sm:$0xff]   ;;  %v785_v55 = vld [vmem:[%s1704_s4 + $0x60] sm:$0xff] }
  0x10   :  { %260 = vperm.xlu1 %1124, %v222_v31   ;;  %v782_v54 = vld [vmem:[%s1704_s4 + $0x48] sm:$0xff]  ;;  %1078 = vmatprep.subr.bf16.mxu1 %v1125_v53  ;;  %v784_v56 = vld [vmem:[%s1704_s4 + $0x58] sm:$0xff]  ;;  %v1126_v58 = vld [vmem:[%s1705_s5] sm:$0xff]  }
  0x11   :  { %255 = vperm.xlu0 %1123, %v221_v32   ;;  %1079 = vmatpush3.bf16.msra.mxu1 %v1125_v53  ;;  %v786_v57 = vld [vmem:[%s1704_s4 + $0x68] sm:$0xff]  ;;  %v185_v4 = vld [vmem:[%s1706_s0] sm:$0xff]  ;;  %v188_v6 = vld [vmem:[%s1706_s0 + $0x18] sm:$0xff] }
  0x12   :  { %1080 = vmatprep.subr.bf16.mxu1 %v1126_v58  ;;  %v187_v7 = vld [vmem:[%s1706_s0 + $0x10] sm:$0xff]  ;;  %v186_v10 = vld [vmem:[%s1706_s0 + $0x8] sm:$0xff]  ;;  %v189_v27 = vld [vmem:[%s1706_s0 + $0x20] sm:$0xff] }
  0x13   :  { %v194_v25 = vld [vmem:[%s1706_s0 + $0x48] sm:$0xff]  ;;  %v192_v29 = vld [vmem:[%s1706_s0 + $0x38] sm:$0xff]  ;;  %v191_v31 = vld [vmem:[%s1706_s0 + $0x30] sm:$0xff] }
  0x14   :  { %270 = vperm.xlu1 %1124, %v224_v33   ;;  %v193_v33 = vld [vmem:[%s1706_s0 + $0x40] sm:$0xff] }
  0x15   :  { %265 = vperm.xlu0 %1123, %v223_v34   ;;  %1081 = vmatpush3.bf16.msra.mxu1 %v1126_v58 }
  0x18   :  { %280 = vperm.xlu1 %1124, %v226_v35  }
  0x19   :  { %275 = vperm.xlu0 %1123, %v225_v36   ;;  %v190_v36 = vld [vmem:[%s1706_s0 + $0x28] sm:$0xff] }
  0x1c   :  { %290 = vperm.xlu1 %1124, %v228_v37  }
  0x1d   :  { %285 = vperm.xlu0 %1123, %v227_v38  }
  0x20   :  { %300 = vperm.xlu1 %1124, %v230_v39  }
  0x21   :  { %295 = vperm.xlu0 %1123, %v229_v40  }
  0x24   :  { %310 = vperm.xlu1 %1124, %v232_v41  }
  0x25   :  { %305 = vperm.xlu0 %1123, %v231_v42  }
  0x28   :  { %791 = vperm.xlu1 %1124, %v773_v43  }
  0x29   :  { %796 = vperm.xlu0 %1123, %v774_v44  }
  0x2c   :  { %801 = vperm.xlu1 %1124, %v775_v45  }
  0x2d   :  { %811 = vperm.xlu0 %1123, %v777_v46  }
  0x30   :  { %806 = vperm.xlu1 %1124, %v776_v47   ;;  %v196_v47 = vld [vmem:[%s1706_s0 + $0x58] sm:$0xff] }
  0x31   :  { %821 = vperm.xlu0 %1123, %v779_v48  }
  0x34   :  { %816 = vperm.xlu1 %1124, %v778_v49  }
  0x35   :  { %831 = vperm.xlu0 %1123, %v781_v50  }
  0x38   :  { %826 = vperm.xlu1 %1124, %v780_v51  }
  0x39   :  { %841 = vperm.xlu0 %1123, %v783_v52  }
  0x3c   :  { %836 = vperm.xlu1 %1124, %v782_v54   ;;  %v198_v54 = vld [vmem:[%s1706_s0 + $0x68] sm:$0xff] }
  0x3d   :  { %851 = vperm.xlu0 %1123, %v785_v55   ;;  %v195_v55 = vld [vmem:[%s1706_s0 + $0x50] sm:$0xff] }
  0x40   :  { %846 = vperm.xlu1 %1124, %v784_v56  }
  0x44   :  { %856 = vperm.xlu1 %1124, %v786_v57  }
  0x83   :  { %v246_v59 = vpop.permute.xlu1 %245 }
  0x84   :  { %v236_v60 = vpop.permute.xlu0 %235 }
  0x87   :  { %v251_v61 = vpop.permute.xlu1 %250 }
  0x88   :  { %v241_v62 = vpop.permute.xlu0 %240 }
  0x8b   :  { %v261_v63 = vpop.permute.xlu1 %260 }
  0x8c   :  { %v256_v2 = vpop.permute.xlu0 %255 }
  0x8f   :  { %v271_v11 = vpop.permute.xlu1 %270 }
  0x90   :  { %v266_v17 = vpop.permute.xlu0 %265 }
  0x93   :  { %v281_v32 = vpop.permute.xlu1 %280 }
  0x94   :  { %v276_v37 = vpop.permute.xlu0 %275 }
  0x97   :  { %v291_v51 = vpop.permute.xlu1 %290 }
  0x98   :  { %v286_v58 = vpop.permute.xlu0 %285 }
  0xc6   :  { %v1064_v0 = vpop.f32.mrf.mxu0 }
  0xc7   :  { %v1399_v1 = vpop.f32.mrf.mxu1  ;;  %v203_v14 = vadd.f32 %v1064_v0, %v187_v7  ;;  %v296_v7 = vpop.permute.xlu0 %295 }
  0xc8   :  { %v122_v3 = vpop.f32.mrf.mxu0  ;;  %v211_v0 = vadd.f32 %v1399_v1, %v195_v55 }
  0xc9   :  { %v154_v5 = vpop.f32.mrf.mxu1  ;;  %v201_v12 = vadd.f32 %v185_v4, %v122_v3  ;;  %v315_v24 = vmul.f32 %v246_v59, %v203_v14  ;;  %v301_v3 = vpop.permute.xlu1 %300 }
  0xca   :  { %v1065_v8 = vpop.f32.mrf.mxu0  ;;  %v209_v44 = vadd.f32 %v193_v33, %v154_v5  ;;  %v200_v5 = vld [vmem:[%s1706_s0 + $0x78] sm:$0xff] }
  0xcb   :  { %v1073_v9 = vpop.f32.mrf.mxu1  ;;  %v204_v13 = vadd.f32 %v1065_v8, %v188_v6  ;;  %v313_v22 = vmul.f32 %v236_v60, %v201_v12  ;;  %v197_v60 = vld [vmem:[%s1706_s0 + $0x60] sm:$0xff]  ;;  %v323_v8 = vmul.f32 %v286_v58, %v211_v0 }
  0xcc   :  { %v125_v15 = vpop.f32.mrf.mxu0  ;;  %v321_v56 = vmul.f32 %v276_v37, %v209_v44  ;;  %v212_v59 = vadd.f32 %v1073_v9, %v196_v47  ;;  %v199_v9 = vld [vmem:[%s1706_s0 + $0x70] sm:$0xff] }
  0xcd   :  { %v157_v16 = vpop.f32.mrf.mxu1  ;;  %v202_v18 = vadd.f32 %v186_v10, %v125_v15  ;;  %v316_v19 = vmul.f32 %v251_v61, %v204_v13  ;;  %v311_v14 = vpop.permute.xlu1 %310 }
  0xce   :  { %v1068_v20 = vpop.f32.mrf.mxu0  ;;  %v210_v38 = vadd.f32 %v194_v25, %v157_v16  ;;  %v324_v4 = vmul.f32 %v291_v51, %v212_v59  ;;  %v306_v16 = vpop.permute.xlu0 %305 }
  0xcf   :  { %v1076_v21 = vpop.f32.mrf.mxu1  ;;  %v314_v23 = vmul.f32 %v241_v62, %v202_v18  ;;  %v330_v34 = vpack.c.bf16 %v316_v19, %v315_v24  ;;  %v207_v41 = vadd.f32 %v1068_v20, %v191_v31  ;;  %v1127_v19 = vld [vmem:[%s1707_s7 + $0x8] sm:$0xff]   ;;  %v1128_v20 = vld [vmem:[%s1707_s7] sm:$0xff]  }
  0xd0   :  { %v138_v26 = vpop.f32.mrf.mxu0  ;;  %v322_v48 = vmul.f32 %v281_v32, %v210_v38  ;;  %v334_v1 = vpack.c.bf16 %v324_v4, %v323_v8  ;;  %v215_v13 = vadd.f32 %v1076_v21, %v199_v9  ;;  %1098 = vmatprep.subr.bf16.mxu0 %v1127_v19 }
  0xd1   :  { %v170_v28 = vpop.f32.mrf.mxu1  ;;  %v329_v30 = vpack.c.bf16 %v314_v23, %v313_v22  ;;  %v205_v39 = vadd.f32 %v189_v27, %v138_v26  ;;  %v319_v52 = vmul.f32 %v266_v17, %v207_v41  ;;  %1099 = vmatpush3.bf16.msra.mxu0 %v1127_v19  ;;  %v978_v22 = vld [vmem:[%s1708_s6] ss:$0 sm:$0xff] }
  0xd2   :  { %v1069_v35 = vpop.f32.mrf.mxu0  ;;  %v333_v62 = vpack.c.bf16 %v322_v48, %v321_v56  ;;  %v327_v17 = vmul.f32 %v306_v16, %v215_v13  ;;  %1100 = vmatprep.subr.bf16.mxu0 %v1128_v20 }
  0xd3   :  { %v208_v40 = vadd.f32 %v1069_v35, %v192_v29  ;;  %1082 = vmatprep.mubr.msk.bf16.mxu1 %vm360_vm2, %v329_v30  ;;  %v1077_v42 = vpop.f32.mrf.mxu1  ;;  %v317_v49 = vmul.f32 %v256_v2, %v205_v39  ;;  %v213_v2 = vadd.f32 %v197_v60, %v170_v28 }
  0xd4   :  { %v141_v43 = vpop.f32.mrf.mxu0  ;;  %1083 = vmatmul.mubr.msk.bf16.vlgmr.msra.gmra.mxu1 %vm360_vm2, %v330_v34 }
  0xd5   :  { %v206_v45 = vadd.f32 %v190_v36, %v141_v43  ;;  %v320_v46 = vmul.f32 %v271_v11, %v208_v40  ;;  %v173_v53 = vpop.f32.mrf.mxu1  ;;  %v325_v10 = vmul.f32 %v296_v7, %v213_v2  ;;  %v216_v11 = vadd.f32 %v1077_v42, %v200_v5  ;;  %1101 = vmatpush3.bf16.msra.mxu0 %v1128_v20 }
  0xd7   :  { %v318_v50 = vmul.f32 %v261_v63, %v206_v45  ;;  %v332_v61 = vpack.c.bf16 %v320_v46, %v319_v52  ;;  %v214_v63 = vadd.f32 %v198_v54, %v173_v53  ;;  %v328_v15 = vmul.f32 %v311_v14, %v216_v11 }
  0xd9   :  { %v331_v57 = vpack.c.bf16 %v318_v50, %v317_v49  ;;  %v326_v6 = vmul.f32 %v301_v3, %v214_v63  ;;  %v336_v18 = vpack.c.bf16 %v328_v15, %v327_v17 }
  0xdb   :  { %1086 = vmatprep.mubr.msk.bf16.mxu1 %vm360_vm2, %v331_v57  ;;  %v335_v12 = vpack.c.bf16 %v326_v6, %v325_v10 }
  0xdc   :  { %1087 = vmatmul.mubr.msk.bf16.gmra.mxu1 %vm360_vm2, %v332_v61 }
  0xdd   :  { %1090 = vmatprep.mubr.msk.bf16.mxu1 %vm360_vm2, %v333_v62 }
  0xe4   :  { %1091 = vmatmul.mubr.msk.bf16.gmra.mxu1 %vm360_vm2, %v334_v1 }
  0xe5   :  { %1094 = vmatprep.mubr.msk.bf16.mxu1 %vm360_vm2, %v335_v12 }
  0xec   :  { %1095 = vmatmul.mubr.msk.bf16.gmra.mxu1 %vm360_vm2, %v336_v18 }
 0x194   :  { %v1084_v21 = vpop.f32.mrf.mxu1 }
 0x195   :  { %v428_v27 = vadd.f32 %v1084_v21, %v978_v22 }
 0x196   :  { %v419_v23 = vpop.f32.mrf.mxu1 }
 0x197   :  { %v420_v24 = vadd.f32 %v978_v22, %v419_v23 }
 0x198   :  { %v1085_v25 = vpop.f32.mrf.mxu1 }
 0x199   :  { %v431_v26 = vadd.f32 %v1085_v25, %v978_v22  ;;  %1129 = vtanh.f32 %v420_v24 }
 0x19a   :  { %v422_v28 = vpop.f32.mrf.mxu1 }
 0x19b   :  { %v423_v29 = vadd.f32 %v978_v22, %v422_v28  ;;  %1131 = vtanh.f32 %v431_v26 }
 0x19c   :  { %v1088_v30 = vpop.f32.mrf.mxu1 }
 0x19d   :  { %1133 = vtanh.f32 %v423_v29  ;;  %v444_v35 = vadd.f32 %v1088_v30, %v978_v22 }
 0x19e   :  { %1135 = vtanh.f32 %v428_v27  ;;  %v435_v31 = vpop.f32.mrf.mxu1 }
 0x19f   :  { %v436_v32 = vadd.f32 %v978_v22, %v435_v31 }
 0x1a0   :  { %v1089_v33 = vpop.f32.mrf.mxu1 }
 0x1a1   :  { %v447_v34 = vadd.f32 %v1089_v33, %v978_v22  ;;  %1137 = vtanh.f32 %v436_v32 }
 0x1a2   :  { %v438_v36 = vpop.f32.mrf.mxu1 }
 0x1a3   :  { %v439_v37 = vadd.f32 %v978_v22, %v438_v36  ;;  %1139 = vtanh.f32 %v447_v34 }
 0x1a4   :  { %v1092_v38 = vpop.f32.mrf.mxu1 }
 0x1a5   :  { %1141 = vtanh.f32 %v439_v37  ;;  %v460_v46 = vadd.f32 %v1092_v38, %v978_v22 }
 0x1a6   :  { %1143 = vtanh.f32 %v444_v35  ;;  %v451_v39 = vpop.f32.mrf.mxu1  ;;  %v1130_v41 = vpop.eup %1129 }
 0x1a7   :  { %v452_v40 = vadd.f32 %v978_v22, %v451_v39 }
 0x1a8   :  { %v1093_v42 = vpop.f32.mrf.mxu1  ;;  %v1132_v43 = vpop.eup %1131 }
 0x1a9   :  { %v463_v44 = vadd.f32 %v1093_v42, %v978_v22  ;;  %1145 = vtanh.f32 %v452_v40 }
 0x1aa   :  { %v1134_v45 = vpop.eup %1133  ;;  %v454_v47 = vpop.f32.mrf.mxu1 }
 0x1ab   :  { %v1136_v48 = vpop.eup %1135  ;;  %v455_v49 = vadd.f32 %v978_v22, %v454_v47  ;;  %v498_v50 = vpack.c.bf16 %v1134_v45, %v1130_v41  ;;  %1147 = vtanh.f32 %v463_v44 }
 0x1ac   :  { %v499_v51 = vpack.c.bf16 %v1132_v43, %v1136_v48  ;;  %v1096_v52 = vpop.f32.mrf.mxu1 }
 0x1ad   :  { %1149 = vtanh.f32 %v455_v49  ;;  %1102 = vmatprep.mubr.msk.bf16.mxu0 %vm360_vm2, %v498_v50  ;;  %v476_v60 = vadd.f32 %v1096_v52, %v978_v22 }
 0x1ae   :  { %1151 = vtanh.f32 %v460_v46  ;;  %v467_v53 = vpop.f32.mrf.mxu1  ;;  %1103 = vmatmul.mubr.msk.bf16.vlgmr.msra.gmra.mxu0 %vm360_vm2, %v499_v51  ;;  %v1138_v55 = vpop.eup %1137 }
 0x1af   :  { %v468_v54 = vadd.f32 %v978_v22, %v467_v53 }
 0x1b0   :  { %v1097_v56 = vpop.f32.mrf.mxu1  ;;  %v1140_v57 = vpop.eup %1139 }
 0x1b1   :  { %v479_v58 = vadd.f32 %v1097_v56, %v978_v22  ;;  %1153 = vtanh.f32 %v468_v54 }
 0x1b2   :  { %v1142_v59 = vpop.eup %1141  ;;  %v470_v61 = vpop.f32.mrf.mxu1 }
 0x1b3   :  { %v1144_v62 = vpop.eup %1143  ;;  %v471_v63 = vadd.f32 %v978_v22, %v470_v61  ;;  %v500_v0 = vpack.c.bf16 %v1142_v59, %v1138_v55  ;;  %1155 = vtanh.f32 %v479_v58 }
 0x1b4   :  { %v501_v2 = vpack.c.bf16 %v1140_v57, %v1144_v62  ;;  %v788_v62 = vld [vmem:[%s1704_s4 + $0x78] sm:$0xff] }
 0x1b5   :  { %1157 = vtanh.f32 %v471_v63  ;;  %1106 = vmatprep.mubr.msk.bf16.mxu0 %vm360_vm2, %v500_v0  ;;  %v787_v63 = vld [vmem:[%s1704_s4 + $0x70] sm:$0xff]  ;;  %v1561_v0 = vpop.permute.xlu1 %791 }
 0x1b6   :  { %1159 = vtanh.f32 %v476_v60  ;;  %1107 = vmatmul.mubr.msk.bf16.gmra.mxu0 %vm360_vm2, %v501_v2  ;;  %v1146_v3 = vpop.eup %1145 }
 0x1b8   :  { %v1148_v4 = vpop.eup %1147 }
 0x1b9   :  { %v802_v2 = vpop.permute.xlu1 %801 }
 0x1ba   :  { %v1150_v5 = vpop.eup %1149 }
 0x1bb   :  { %v1152_v6 = vpop.eup %1151  ;;  %v502_v7 = vpack.c.bf16 %v1150_v5, %v1146_v3  ;;  %v1563_v3 = vpop.permute.xlu0 %796 }
 0x1bc   :  { %v503_v8 = vpack.c.bf16 %v1148_v4, %v1152_v6 }
 0x1bd   :  { %1110 = vmatprep.mubr.msk.bf16.mxu0 %vm360_vm2, %v502_v7  ;;  %v1565_v4 = vpop.permute.xlu1 %806 }
 0x1be   :  { %1111 = vmatmul.mubr.msk.bf16.gmra.mxu0 %vm360_vm2, %v503_v8  ;;  %v1154_v9 = vpop.eup %1153 }
 0x1bf   :  { %v1567_v5 = vpop.permute.xlu0 %811 }
 0x1c0   :  { %v1156_v10 = vpop.eup %1155 }
 0x1c1   :  { %v1569_v6 = vpop.permute.xlu1 %816 }
 0x1c2   :  { %v1158_v1 = vpop.eup %1157 }
 0x1c3   :  { %v1160_v11 = vpop.eup %1159  ;;  %v504_v12 = vpack.c.bf16 %v1158_v1, %v1154_v9  ;;  %v1571_v7 = vpop.permute.xlu0 %821 }
 0x1c4   :  { %v505_v13 = vpack.c.bf16 %v1156_v10, %v1160_v11 }
 0x1c5   :  { %1114 = vmatprep.mubr.msk.bf16.mxu0 %vm360_vm2, %v504_v12  ;;  %v1573_v8 = vpop.permute.xlu1 %826 }
 0x1c6   :  { %1115 = vmatmul.mubr.msk.bf16.gmra.mxu0 %vm360_vm2, %v505_v13 }
 0x1c7   :  { %v1575_v9 = vpop.permute.xlu0 %831 }
 0x1c9   :  { %v1577_v10 = vpop.permute.xlu1 %836 }
 0x1cb   :  { %v1579_v1 = vpop.permute.xlu0 %841 }
 0x1cd   :  { %v1581_v11 = vpop.permute.xlu1 %846 }
 0x1cf   :  { %v1583_v12 = vpop.permute.xlu0 %851 }
 0x26e   :  { %v1475_v14 = vpop.f32.mrf.mxu0 }
 0x26f   :  { %v645_v15 = vmul.f32 %v1475_v14, %v1475_v14 }
 0x270   :  { %v1479_v16 = vpop.f32.mrf.mxu0 }
 0x271   :  { %v643_v17 = vmul.f32 %v1479_v16, %v1479_v16  ;;  %v665_v18 = vsel %vm360_vm2, %v645_v15, 0.0 }
 0x272   :  { %666 = vadd.xlane.f32.xlu0 %v665_v18  ;;  %v1484_v19 = vpop.f32.mrf.mxu0 }
 0x273   :  { %v646_v21 = vmul.f32 %v1484_v19, %v1484_v19  ;;  %v659_v23 = vsel %vm360_vm2, %v643_v17, 0.0  ;;  %v1585_v17 = vpop.permute.xlu1 %856 }
 0x274   :  { %v1486_v20 = vpop.f32.mrf.mxu0 }
 0x275   :  { %v644_v22 = vmul.f32 %v1486_v20, %v1486_v20  ;;  %v668_v28 = vsel %vm360_vm2, %v646_v21, 0.0 }
 0x276   :  { %660 = vadd.xlane.f32.xlu0 %v659_v23  ;;  %v1493_v24 = vpop.f32.mrf.mxu0 }
 0x277   :  { %v649_v25 = vmul.f32 %v1493_v24, %v1493_v24  ;;  %v662_v26 = vsel %vm360_vm2, %v644_v22, 0.0 }
 0x278   :  { %663 = vadd.xlane.f32.xlu1 %v662_v26  ;;  %v1498_v27 = vpop.f32.mrf.mxu0 }
 0x279   :  { %v647_v30 = vmul.f32 %v1498_v27, %v1498_v27  ;;  %v677_v32 = vsel %vm360_vm2, %v649_v25, 0.0 }
 0x27a   :  { %669 = vadd.xlane.f32.xlu0 %v668_v28  ;;  %v1501_v29 = vpop.f32.mrf.mxu0 }
 0x27b   :  { %v650_v31 = vmul.f32 %v1501_v29, %v1501_v29  ;;  %v671_v38 = vsel %vm360_vm2, %v647_v30, 0.0 }
 0x27c   :  { %678 = vadd.xlane.f32.xlu1 %v677_v32  ;;  %v1508_v33 = vpop.f32.mrf.mxu0 }
 0x27d   :  { %v648_v34 = vmul.f32 %v1508_v33, %v1508_v33  ;;  %v680_v35 = vsel %vm360_vm2, %v650_v31, 0.0 }
 0x27e   :  { %681 = vadd.xlane.f32.xlu0 %v680_v35  ;;  %v1513_v36 = vpop.f32.mrf.mxu0 }
 0x27f   :  { %v653_v37 = vmul.f32 %v1513_v36, %v1513_v36  ;;  %v674_v40 = vsel %vm360_vm2, %v648_v34, 0.0 }
 0x280   :  { %672 = vadd.xlane.f32.xlu1 %v671_v38  ;;  %v1518_v39 = vpop.f32.mrf.mxu0  ;;  %v1590_v38 = vstv %s1709_s8 }
 0x281   :  { %v651_v42 = vmul.f32 %v1518_v39, %v1518_v39  ;;  %v689_v44 = vsel %vm360_vm2, %v653_v37, 0.0 }
 0x282   :  { %675 = vadd.xlane.f32.xlu0 %v674_v40  ;;  %v1521_v41 = vpop.f32.mrf.mxu0 }
 0x283   :  { %v654_v43 = vmul.f32 %v1521_v41, %v1521_v41  ;;  %v683_v50 = vsel %vm360_vm2, %v651_v42, 0.0 }
 0x284   :  { %690 = vadd.xlane.f32.xlu1 %v689_v44  ;;  %v1528_v45 = vpop.f32.mrf.mxu0 }
 0x285   :  { %v652_v46 = vmul.f32 %v1528_v45, %v1528_v45  ;;  %v692_v47 = vsel %vm360_vm2, %v654_v43, 0.0 }
 0x286   :  { %693 = vadd.xlane.f32.xlu0 %v692_v47  ;;  %v1533_v48 = vpop.f32.mrf.mxu0 }
 0x287   :  { %v657_v49 = vmul.f32 %v1533_v48, %v1533_v48  ;;  %v686_v52 = vsel %vm360_vm2, %v652_v46, 0.0 }
 0x288   :  { %684 = vadd.xlane.f32.xlu1 %v683_v50  ;;  %v1538_v51 = vpop.f32.mrf.mxu0 }
 0x289   :  { %v655_v54 = vmul.f32 %v1538_v51, %v1538_v51  ;;  %v701_v56 = vsel %vm360_vm2, %v657_v49, 0.0 }
 0x28a   :  { %687 = vadd.xlane.f32.xlu0 %v686_v52  ;;  %v1541_v53 = vpop.f32.mrf.mxu0 }
 0x28b   :  { %v658_v55 = vmul.f32 %v1541_v53, %v1541_v53  ;;  %v695_v60 = vsel %vm360_vm2, %v655_v54, 0.0 }
 0x28c   :  { %702 = vadd.xlane.f32.xlu1 %v701_v56  ;;  %v1548_v57 = vpop.f32.mrf.mxu0 }
 0x28d   :  { %v656_v58 = vmul.f32 %v1548_v57, %v1548_v57  ;;  %v704_v59 = vsel %vm360_vm2, %v658_v55, 0.0 }
 0x28e   :  { %705 = vadd.xlane.f32.xlu0 %v704_v59 }
 0x28f   :  { %v698_v61 = vsel %vm360_vm2, %v656_v58, 0.0 }
 0x290   :  { %696 = vadd.xlane.f32.xlu1 %v695_v60 }
 0x292   :  { %699 = vadd.xlane.f32.xlu0 %v698_v61 }
 0x2a1   :  { %866 = vperm.xlu1 %1124, %v788_v62  }
 0x2a8   :  { %861 = vperm.xlu0 %1123, %v787_v63  }
 0x2fb   :  { %v667_v13 = vpop.xlane.xlu0 %666 }
 0x2fc   :  { %v709_v15 = vadd.f32 1e-12, %v667_v13 }
 0x2fe   :  { %1161 = vrsqrt.f32 %v709_v15 }
 0x2ff   :  { %v661_v18 = vpop.xlane.xlu0 %660 }
 0x300   :  { %v707_v21 = vadd.f32 1e-12, %v661_v18 }
 0x301   :  { %v664_v22 = vpop.xlane.xlu1 %663 }
 0x302   :  { %1163 = vrsqrt.f32 %v707_v21  ;;  %v708_v23 = vadd.f32 1e-12, %v664_v22 }
 0x303   :  { %v670_v25 = vpop.xlane.xlu0 %669 }
 0x304   :  { %1165 = vrsqrt.f32 %v708_v23  ;;  %v710_v26 = vadd.f32 1e-12, %v670_v25 }
 0x305   :  { %v679_v28 = vpop.xlane.xlu1 %678 }
 0x306   :  { %1167 = vrsqrt.f32 %v710_v26  ;;  %v713_v30 = vadd.f32 1e-12, %v679_v28 }
 0x307   :  { %v682_v31 = vpop.xlane.xlu0 %681 }
 0x308   :  { %1169 = vrsqrt.f32 %v713_v30  ;;  %v714_v32 = vadd.f32 1e-12, %v682_v31 }
 0x309   :  { %v673_v34 = vpop.xlane.xlu1 %672 }
 0x30a   :  { %1171 = vrsqrt.f32 %v714_v32  ;;  %v711_v35 = vadd.f32 1e-12, %v673_v34 }
 0x30b   :  { %v1162_v37 = vpop.eup %1161  ;;  %v676_v40 = vpop.xlane.xlu0 %675 }
 0x30c   :  { %v741_v42 = vmul.f32 %v1162_v37, %v1475_v14  ;;  %1173 = vrsqrt.f32 %v711_v35  ;;  %v712_v43 = vadd.f32 1e-12, %v676_v40 }
 0x30d   :  { %v691_v44 = vpop.xlane.xlu1 %690 }
 0x30e   :  { %v759_v46 = vmul.f32 %v1590_v38, %v741_v42  ;;  %1175 = vrsqrt.f32 %v712_v43  ;;  %v717_v47 = vadd.f32 1e-12, %v691_v44 }
 0x30f   :  { %v1164_v49 = vpop.eup %1163  ;;  %v694_v50 = vpop.xlane.xlu0 %693 }
 0x310   :  { %v871_v52 = vmul.f32 %v802_v2, %v759_v46  ;;  %v739_v54 = vmul.f32 %v1164_v49, %v1479_v16  ;;  %1177 = vrsqrt.f32 %v717_v47  ;;  %v718_v55 = vadd.f32 1e-12, %v694_v50 }
 0x311   :  { %v1166_v56 = vpop.eup %1165  ;;  %v685_v58 = vpop.xlane.xlu1 %684 }
 0x312   :  { %v1017_v59 = vpack.c.bf16 %v871_v52, %v871_v52  ;;  %v757_v14 = vmul.f32 %v1590_v38, %v739_v54  ;;  %v740_v60 = vmul.f32 %v1166_v56, %v1486_v20  ;;  %1179 = vrsqrt.f32 %v718_v55 }
 0x313   :  { %v1168_v61 = vpop.eup %1167  ;;  %v715_v62 = vadd.f32 1e-12, %v685_v58  ;;  %v688_v63 = vpop.xlane.xlu0 %687 }
 0x314   :  { %952 = vst.msk [vmem:[%s1710_s9 + $0x8] sm:$0xf] %vm949_vm3, %v1017_v59  ;;  %v869_v16 = vmul.f32 %v1561_v0, %v757_v14  ;;  %v758_v2 = vmul.f32 %v1590_v38, %v740_v60  ;;  %v742_v13 = vmul.f32 %v1168_v61, %v1484_v19  ;;  %v716_v15 = vadd.f32 1e-12, %v688_v63 }
 0x315   :  { %v1170_v18 = vpop.eup %1169  ;;  %1181 = vrsqrt.f32 %v715_v62  ;;  %v703_v21 = vpop.xlane.xlu1 %702 }
 0x316   :  { %v1015_v20 = vpack.c.bf16 %v869_v16, %v869_v16  ;;  %v870_v22 = vmul.f32 %v1563_v3, %v758_v2  ;;  %v760_v23 = vmul.f32 %v1590_v38, %v742_v13  ;;  %v745_v25 = vmul.f32 %v1170_v18, %v1493_v24 }
 0x317   :  { %v1172_v26 = vpop.eup %1171  ;;  %1183 = vrsqrt.f32 %v716_v15  ;;  %v721_v28 = vadd.f32 1e-12, %v703_v21  ;;  %v706_v30 = vpop.xlane.xlu0 %705 }
 0x318   :  { %950 = vst.msk [vmem:[%s1710_s9] sm:$0xf] %vm949_vm3, %v1015_v20  ;;  %v1016_v19 = vpack.c.bf16 %v870_v22, %v870_v22  ;;  %v872_v0 = vmul.f32 %v1565_v4, %v760_v23  ;;  %v763_v31 = vmul.f32 %v1590_v38, %v745_v25  ;;  %v746_v3 = vmul.f32 %v1172_v26, %v1501_v29 }
 0x319   :  { %v1174_v32 = vpop.eup %1173  ;;  %1185 = vrsqrt.f32 %v721_v28  ;;  %v722_v34 = vadd.f32 1e-12, %v706_v30  ;;  %v697_v24 = vpop.xlane.xlu1 %696 }
 0x31a   :  { %951 = vst.msk [vmem:[%s1710_s9 + $0x4] sm:$0xf] %vm949_vm3, %v1016_v19  ;;  %v1018_v35 = vpack.c.bf16 %v872_v0, %v872_v0  ;;  %v875_v37 = vmul.f32 %v1571_v7, %v763_v31  ;;  %v764_v40 = vmul.f32 %v1590_v38, %v746_v3  ;;  %v743_v4 = vmul.f32 %v1174_v32, %v1498_v27 }
 0x31b   :  { %v1176_v42 = vpop.eup %1175  ;;  %1187 = vrsqrt.f32 %v722_v34  ;;  %v719_v43 = vadd.f32 1e-12, %v697_v24  ;;  %v700_v29 = vpop.xlane.xlu0 %699 }
 0x31c   :  { %953 = vst.msk [vmem:[%s1710_s9 + $0xc] sm:$0xf] %vm949_vm3, %v1018_v35  ;;  %v1021_v44 = vpack.c.bf16 %v875_v37, %v875_v37  ;;  %v876_v46 = vmul.f32 %v1573_v8, %v764_v40  ;;  %v761_v47 = vmul.f32 %v1590_v38, %v743_v4  ;;  %v744_v7 = vmul.f32 %v1176_v42, %v1508_v33 }
 0x31d   :  { %v1178_v49 = vpop.eup %1177  ;;  %1189 = vrsqrt.f32 %v719_v43  ;;  %v720_v50 = vadd.f32 1e-12, %v700_v29  ;;  %v867_v30 = vpop.permute.xlu1 %866 }
 0x31e   :  { %956 = vst.msk [vmem:[%s1710_s9 + $0x18] sm:$0xf] %vm949_vm3, %v1021_v44  ;;  %v1022_v27 = vpack.c.bf16 %v876_v46, %v876_v46  ;;  %v873_v52 = vmul.f32 %v1567_v5, %v761_v47  ;;  %v762_v54 = vmul.f32 %v1590_v38, %v744_v7  ;;  %v749_v55 = vmul.f32 %v1178_v49, %v1513_v36 }
 0x31f   :  { %v1180_v8 = vpop.eup %1179  ;;  %1191 = vrsqrt.f32 %v720_v50 }
 0x320   :  { %957 = vst.msk [vmem:[%s1710_s9 + $0x1c] sm:$0xf] %vm949_vm3, %v1022_v27  ;;  %v1019_v33 = vpack.c.bf16 %v873_v52, %v873_v52  ;;  %v874_v56 = vmul.f32 %v1569_v6, %v762_v54  ;;  %v767_v58 = vmul.f32 %v1590_v38, %v749_v55  ;;  %v750_v59 = vmul.f32 %v1180_v8, %v1521_v41 }
 0x322   :  { %v1182_v14 = vpop.eup %1181  ;;  %954 = vst.msk [vmem:[%s1710_s9 + $0x10] sm:$0xf] %vm949_vm3, %v1019_v33  ;;  %v1020_v36 = vpack.c.bf16 %v874_v56, %v874_v56  ;;  %v879_v5 = vmul.f32 %v1579_v1, %v767_v58  ;;  %v768_v60 = vmul.f32 %v1590_v38, %v750_v59 }
 0x323   :  { %v747_v61 = vmul.f32 %v1182_v14, %v1518_v39  ;;  %v862_v23 = vpop.permute.xlu0 %861 }
 0x324   :  { %v1184_v62 = vpop.eup %1183  ;;  %955 = vst.msk [vmem:[%s1710_s9 + $0x14] sm:$0xf] %vm949_vm3, %v1020_v36  ;;  %v1025_v41 = vpack.c.bf16 %v879_v5, %v879_v5  ;;  %v880_v6 = vmul.f32 %v1581_v11, %v768_v60 }
 0x325   :  { %v765_v63 = vmul.f32 %v1590_v38, %v747_v61  ;;  %v748_v16 = vmul.f32 %v1184_v62, %v1528_v45 }
 0x326   :  { %v1186_v2 = vpop.eup %1185  ;;  %960 = vst.msk [vmem:[%s1710_s9 + $0x28] sm:$0xf] %vm949_vm3, %v1025_v41  ;;  %v1026_v39 = vpack.c.bf16 %v880_v6, %v880_v6 }
 0x327   :  { %v877_v1 = vmul.f32 %v1575_v9, %v765_v63  ;;  %v766_v13 = vmul.f32 %v1590_v38, %v748_v16  ;;  %v753_v15 = vmul.f32 %v1186_v2, %v1533_v48 }
 0x328   :  { %v1188_v18 = vpop.eup %1187  ;;  %961 = vst.msk [vmem:[%s1710_s9 + $0x2c] sm:$0xf] %vm949_vm3, %v1026_v39 }
 0x329   :  { %v1023_v45 = vpack.c.bf16 %v877_v1, %v877_v1  ;;  %v878_v11 = vmul.f32 %v1577_v10, %v766_v13  ;;  %v754_v21 = vmul.f32 %v1188_v18, %v1541_v53  ;;  %v771_v20 = vmul.f32 %v1590_v38, %v753_v15 }
 0x32a   :  { %v1190_v22 = vpop.eup %1189 }
 0x32b   :  { %958 = vst.msk [vmem:[%s1710_s9 + $0x20] sm:$0xf] %vm949_vm3, %v1023_v45  ;;  %v1024_v48 = vpack.c.bf16 %v878_v11, %v878_v11  ;;  %v751_v9 = vmul.f32 %v1190_v22, %v1538_v51  ;;  %v772_v25 = vmul.f32 %v1590_v38, %v754_v21  ;;  %v883_v26 = vmul.f32 %v862_v23, %v771_v20 }
 0x32c   :  { %v1192_v28 = vpop.eup %1191 }
 0x32d   :  { %959 = vst.msk [vmem:[%s1710_s9 + $0x24] sm:$0xf] %vm949_vm3, %v1024_v48  ;;  %v769_v53 = vmul.f32 %v1590_v38, %v751_v9  ;;  %v752_v10 = vmul.f32 %v1192_v28, %v1548_v57  ;;  %v884_v19 = vmul.f32 %v867_v30, %v772_v25  ;;  %v1029_v0 = vpack.c.bf16 %v883_v26, %v883_v26 }
 0x32f   :  { %v881_v31 = vmul.f32 %v1583_v12, %v769_v53  ;;  %v770_v51 = vmul.f32 %v1590_v38, %v752_v10  ;;  %v1030_v3 = vpack.c.bf16 %v884_v19, %v884_v19  ;;  %964 = vst.msk [vmem:[%s1710_s9 + $0x38] sm:$0xf] %vm949_vm3, %v1029_v0 }
 0x331   :  { %v1027_v32 = vpack.c.bf16 %v881_v31, %v881_v31  ;;  %v882_v34 = vmul.f32 %v1585_v17, %v770_v51  ;;  %965 = vst.msk [vmem:[%s1710_s9 + $0x3c] sm:$0xf] %vm949_vm3, %v1030_v3 }
 0x333   :  { %962 = vst.msk [vmem:[%s1710_s9 + $0x30] sm:$0xf] %vm949_vm3, %v1027_v32  ;;  %v1028_v57 = vpack.c.bf16 %v882_v34, %v882_v34 }
 0x335   :  { %963 = vst.msk [vmem:[%s1710_s9 + $0x34] sm:$0xf] %vm949_vm3, %v1028_v57 }

</bundles_post_ra>
